<compile_context>
chip_gen: v7x
topology: tpu7x:2x2x1
jax: 0.10.0
libtpu: 0.0.40
codegen_flags: <defaults>
</compile_context>

<pallas_src>
import functools
import math

import jax
import jax.numpy as jnp
from jax.experimental import pallas as pl
from jax.experimental.pallas import tpu as pltpu

EPS_LN = 1e-5


# ---------------------------------------------------------------------------
# Static packing layout shared by host-side packer and the kernel
# ---------------------------------------------------------------------------
def _layout(D, R, H, hidden):
    h2 = hidden // 2
    # --- w_blob: rows = D, column-concatenated matrices ---
    cols = {}
    off = 0
    cols["rw"] = off;    off += R * D          # R stacked (D, D) recursive weights
    cols["dw1"] = off;   off += hidden         # density layer-1 weight (x part)   (D, hidden)
    cols["wqkv"] = off;  off += 3 * D          # attention in-proj                  (D, 3D)
    cols["wo"] = off;    off += D              # attention out-proj                 (D, D)
    cols["hm"] = off;    off += H              # head indicator / sqrt(head_dim)    (D, H)
    w_cols = off
    # --- r_blob: row-stacked small matrices / bias rows, zero-padded to r_width cols ---
    r_width = max(hidden, 3 * D, D, h2)
    rows = {}
    roff = 0
    rows["w2"] = roff;      roff += hidden     # density layer-2 weight  (hidden, h2)
    rows["hmt"] = roff;     roff += H          # head indicator^T        (H, D)
    rows["db1"] = roff;     roff += 1          # (1, hidden)
    rows["dw1_lvl"] = roff; roff += 1          # level row of W1         (1, hidden)
    rows["db2"] = roff;     roff += 1          # (1, h2)
    rows["w3"] = roff;      roff += 1          # density layer-3 weight  (1, h2)
    rows["db3"] = roff;     roff += 1          # (1, 1)
    rows["bqkv"] = roff;    roff += 1          # (1, 3D)
    rows["bo"] = roff;      roff += 1          # (1, D)
    rows["sf"] = roff;      roff += R          # per-step scaling factors (R, D)
    rows["bias"] = roff;    roff += R          # per-step bias terms      (R, D)
    rows["ln_g"] = roff;    roff += R          # LayerNorm gamma          (R, D)
    rows["ln_b"] = roff;    roff += R          # LayerNorm beta           (R, D)
    r_rows = roff
    return cols, w_cols, rows, r_rows, r_width


# ---------------------------------------------------------------------------
# Fused kernel: RecursiveOperator.forward(x, adaptive_depth=True)
# ---------------------------------------------------------------------------
def _recursive_operator_kernel(x_ref, w_ref, r_ref, o_ref, *,
                               op_type, max_recursion, num_heads, hidden_dim,
                               use_bf16_mxu=False):
    B, D = x_ref.shape
    R, H, hidden = max_recursion, num_heads, hidden_dim
    h2 = hidden // 2
    cols, _, rows, _, _ = _layout(D, R, H, hidden)
    f32 = jnp.float32
    FMAX = jnp.float32(jnp.finfo(jnp.float32).max)

    def mxdot(a, b):
        if use_bf16_mxu:   # optional: bf16 MXU operands, f32 accumulate (drifts from torch f32)
            a = a.astype(jnp.bfloat16)
            b = b.astype(jnp.bfloat16)
        return jnp.dot(a, b, preferred_element_type=f32)

    def wcol(name, width, extra=0):
        o = cols[name] + extra
        return w_ref[:, o:o + width]

    def rrows(name, nrows, ncols, extra=0):
        o = rows[name] + extra
        return r_ref[o:o + nrows, 0:ncols]

    # ---- density-net weights (shared by every step / level) ----
    dw1 = wcol("dw1", hidden)                 # (D, hidden)
    db1 = rrows("db1", 1, hidden)             # (1, hidden)
    dw1_lvl = rrows("dw1_lvl", 1, hidden)     # (1, hidden)   -- 'level' row of W1
    dw2 = rrows("w2", hidden, h2)             # (hidden, h2)
    db2 = rrows("db2", 1, h2)
    dw3 = rrows("w3", 1, h2)                  # (1, h2)  (out_features = 1)
    db3 = rrows("db3", 1, 1)                  # (1, 1)

    # h1 = activation @ W1 is hoisted out; 'level' only shifts the first-layer bias.
    def dens_from_h1(h1, level):
        b1 = db1 if level == 0 else db1 + float(level) * dw1_lvl
        h = jnp.maximum(h1 + b1, 0.0)
        h = jnp.maximum(mxdot(h, dw2) + db2, 0.0)
        o = jnp.sum(h * dw3, axis=-1, keepdims=True) + db3     # (B, 1)
        return jax.nn.sigmoid(o)

    # ---- Triangle operator: bounded x^x, matmul W, +bias, LayerNorm ----
    def triangle(x, step):
        rw = wcol("rw", D, extra=step * D)          # (D, D)
        sf = rrows("sf", 1, D, extra=step)          # (1, D) (scalar broadcast to lanes)
        bias = rrows("bias", 1, D, extra=step)
        lng = rrows("ln_g", 1, D, extra=step)
        lnb = rrows("ln_b", 1, D, extra=step)
        base = jnp.clip(jnp.abs(x), 0.1, 3.0)                      # clamp(|x|, 0.1, 3.0)
        expo = jnp.minimum(x, 2.0)                                  # clamp(x, max=2.0)
        r = sf * jnp.exp(expo * jnp.log(base + 1e-8))               # scale BEFORE clamp(1000)
        r = jnp.minimum(r, 1000.0)
        t = mxdot(r, rw) + bias
        mu = jnp.mean(t, axis=-1, keepdims=True)
        var = jnp.mean((t - mu) ** 2, axis=-1, keepdims=True)
        return (t - mu) * jax.lax.rsqrt(var + EPS_LN) * lng + lnb

    def square(x, step):                            # Triangle chained 0..step
        out = triangle(x, 0)
        for s in range(1, step + 1):
            out = triangle(out, s)
        return out

    def circle(x, step, dlist):                     # meta-recursion with density modulation
        res = square(x * dlist[0], 0)
        for k in range(1, step + 1):
            res = square(res * dlist[k], k)
        return res

    # ---- multi-head self attention over the S=3 "shape" tokens (aether) ----
    def attention(xs):
        S = len(xs)                                 # 3
        wqkv = wcol("wqkv", 3 * D)
        bqkv = rrows("bqkv", 1, 3 * D)
        wo = wcol("wo", D)
        bo = rrows("bo", 1, D)
        hm = wcol("hm", H)                          # (D, H), already scaled by 1/sqrt(head_dim)
        hmt = rrows("hmt", H, D)                    # (H, D), unscaled indicator

        X = jnp.concatenate(xs, axis=0)             # (S*B, D) token-major
        qkv = mxdot(X, wqkv) + bqkv                 # one QKV matmul for all tokens
        q, k, v = qkv[:, 0:D], qkv[:, D:2 * D], qkv[:, 2 * D:3 * D]
        qs = [q[s * B:(s + 1) * B] for s in range(S)]
        ks = [k[s * B:(s + 1) * B] for s in range(S)]
        vs = [v[s * B:(s + 1) * B] for s in range(S)]

        # all S*S per-head dot products with ONE MXU dot: (S*S*B, D) @ (D, H)
        prod = jnp.concatenate([qs[s] * ks[t] for s in range(S) for t in range(S)], axis=0)
        sc = mxdot(prod, hm)                        # (S*S*B, H) scaled scores

        probs = []                                  # softmax over keys t, per query token s
        for s in range(S):
            rsc = [sc[(s * S + t) * B:(s * S + t + 1) * B] for t in range(S)]
            m = rsc[0]
            for t in range(1, S):
                m = jnp.maximum(m, rsc[t])
            ex = [jnp.exp(r - m) for r in rsc]
            den = ex[0]
            for t in range(1, S):
                den = den + ex[t]
            inv = 1.0 / den
            probs.extend([e * inv for e in ex])

        # broadcast per-head weights to head lanes with ONE (S*S*B, H) @ (H, D) dot
        w_all = mxdot(jnp.concatenate(probs, axis=0), hmt)          # (S*S*B, D)
        ctx = jnp.zeros((B, D), f32)
        for s in range(S):
            for t in range(S):
                ctx = ctx + w_all[(s * S + t) * B:(s * S + t + 1) * B] * vs[t]
        ctx = ctx * (1.0 / S)                       # mean over query tokens BEFORE out-proj
        return mxdot(ctx, wo) + bo                  # exact (linearity of the projection)

    # ---- adaptive-depth recursion, fully in-kernel (masked, lockstep vectorized) ----
    current = x_ref[...]
    active = jnp.ones((1, 1), f32)                  # 1.0 until the loop "breaks"
    for step in range(R):
        # hoisted density first layer: reused by the gate and every level this step
        h1 = mxdot(current, dw1)                    # (B, hidden)
        if op_type == "circle":
            need = list(range(step + 1))
        elif op_type == "aether":
            need = sorted(set(range(min(step, 1) + 1)) | {step})
        else:
            need = [step]
        dl = {lvl: dens_from_h1(h1, lvl) for lvl in need}

        mean_d = jnp.mean(dl[step], axis=0, keepdims=True)          # (1, 1)
        gate = jnp.where(mean_d >= 0.1, 1.0, 0.0)   # torch: break if mean_density < 0.1
        do = active * gate                          # (1, 1) in {0, 1}

        if op_type == "triangle":
            new = triangle(current, step)
        elif op_type == "square":
            new = square(current, step)
        elif op_type == "circle":
            new = circle(current, step, dl)
        elif op_type == "aether":
            tri = triangle(current, step)
            sq = tri if step == 0 else square(current, min(step, 2))   # dedupe at step 0
            ci = circle(current, min(step, 1), dl)
            new = attention([tri, sq, ci])
        else:
            raise ValueError(f"unsupported operator_type: {op_type}")

        current = jnp.where(do > 0.5, new, current)                 # commit even if NaN (torch)
        # single "not finite" test: |x| <= f32max is False exactly for NaN / +-Inf
        bad_f = jnp.where(jnp.abs(new) <= FMAX, 0.0, 1.0)
        any_bad = jnp.max(jnp.max(bad_f, axis=1, keepdims=True), axis=0, keepdims=True)
        active = do * (1.0 - any_bad)               # stop after a NaN/Inf step

    o_ref[...] = current


# ---------------------------------------------------------------------------
# Host-side packing: everything into 2 parameter blobs (3 total DMAs with x)
# ---------------------------------------------------------------------------
def pack_params(params):
    D = params["input_dim"]
    R = params["max_recursion"]
    H = params["num_heads"]
    hidden = params["hidden_dim"]
    h2 = hidden // 2
    hd = D // H
    _, w_cols, _, r_rows, r_width = _layout(D, R, H, hidden)
    d, a = params["density"], params["attn"]

    hm = (jnp.arange(D)[:, None] // hd == jnp.arange(H)[None, :]).astype(jnp.float32)
    hm_scaled = hm / math.sqrt(hd)                  # fold 1/sqrt(head_dim) into the indicator

    rw_cols = jnp.transpose(params["rw"], (1, 0, 2)).reshape(D, R * D)
    w_blob = jnp.concatenate([rw_cols, d["w1"], a["wqkv"], a["wo"], hm_scaled], axis=1)
    assert w_blob.shape == (D, w_cols)

    def pad(m):
        return jnp.pad(m, ((0, 0), (0, r_width - m.shape[1])))

    r_blob = jnp.concatenate([
        pad(d["w2"]),                                             # (hidden, h2)
        pad(hm.T),                                                # (H, D)
        pad(d["b1"].reshape(1, hidden)),
        pad(d["w1_lvl"].reshape(1, hidden)),
        pad(d["b2"].reshape(1, h2)),
        pad(d["w3"].reshape(1, h2)),
        pad(d["b3"].reshape(1, 1)),
        pad(a["bqkv"].reshape(1, 3 * D)),
        pad(a["bo"].reshape(1, D)),
        pad(jnp.broadcast_to(params["sf"][:, None], (R, D))),
        pad(params["bias"]),
        pad(params["ln_g"]),
        pad(params["ln_b"]),
    ], axis=0)
    assert r_blob.shape == (r_rows, r_width)

    return dict(w_blob=w_blob, r_blob=r_blob,
                max_recursion=R, num_heads=H, hidden_dim=hidden)


# ---------------------------------------------------------------------------
# Wrapper: one fused, grid-less pallas_call; everything VMEM-resident
# ---------------------------------------------------------------------------
def recursive_operator_forward(packed, x, op_type, use_bf16_mxu=False):
    kernel = functools.partial(
        _recursive_operator_kernel,
        op_type=op_type,
        max_recursion=packed["max_recursion"],
        num_heads=packed["num_heads"],
        hidden_dim=packed["hidden_dim"],
        use_bf16_mxu=use_bf16_mxu,
    )
    vmem = pl.BlockSpec(memory_space=pltpu.MemorySpace.VMEM)
    return pl.pallas_call(
        kernel,
        out_shape=jax.ShapeDtypeStruct(x.shape, jnp.float32),
        in_specs=[vmem, vmem, vmem],
        out_specs=vmem,
    )(x, packed["w_blob"], packed["r_blob"])


# ---------------------------------------------------------------------------
# Deterministic synthetic parameters (mimic module __init__ shapes)
# ---------------------------------------------------------------------------
def init_params(key, input_dim, max_recursion, num_heads=4, hidden_dim=64):
    D, R, H, hidden = input_dim, max_recursion, num_heads, hidden_dim
    h2 = hidden // 2
    keys = iter(jax.random.split(key, 16))

    def linear(fan_in, fan_out):
        k1, k2 = next(keys), next(keys)
        bound = 1.0 / math.sqrt(fan_in)
        w = jax.random.uniform(k1, (fan_in, fan_out), jnp.float32, -bound, bound)
        b = jax.random.uniform(k2, (1, fan_out), jnp.float32, -bound, bound)
        return w, b

    rw = jax.random.normal(next(keys), (R, D, D), jnp.float32) * 0.1
    sf = jnp.ones((R,), jnp.float32)                 # scaling_factors
    bias = jnp.zeros((R, D), jnp.float32)            # bias_terms
    ln_g = jnp.ones((R, D), jnp.float32)
    ln_b = jnp.zeros((R, D), jnp.float32)

    # density net: Linear(D+1,64)-ReLU-Drop-Linear(64,32)-ReLU-Drop-Linear(32,1)-Sigmoid
    w1, b1 = linear(D + 1, hidden)
    w2, b2 = linear(hidden, h2)
    w3, b3 = linear(h2, 1)
    density = dict(w1=w1[:D], w1_lvl=w1[D:D + 1], b1=b1, w2=w2, b2=b2,
                   w3=w3.reshape(1, h2), b3=b3.reshape(1, 1))

    # step attention (embed_dim=D, num_heads=H)
    bound = 1.0 / math.sqrt(D)
    wqkv = jax.random.uniform(next(keys), (D, 3 * D), jnp.float32, -bound, bound)
    bqkv = jnp.zeros((1, 3 * D), jnp.float32)
    wo, bo = linear(D, D)
    attn = dict(wqkv=wqkv, bqkv=bqkv, wo=wo, bo=bo)

    return dict(input_dim=D, max_recursion=R, num_heads=H, hidden_dim=hidden,
                rw=rw, sf=sf, bias=bias, ln_g=ln_g, ln_b=ln_b,
                density=density, attn=attn)


# ---------------------------------------------------------------------------
if __name__ == "__main__":
    B, D = 8, 32                                     # batch=8, input_dim=32
    key = jax.random.PRNGKey(0)
    kx, kp = jax.random.split(key)
    x = jax.random.normal(kx, (B, D), jnp.float32)

    params = init_params(kp, input_dim=D, max_recursion=3, num_heads=4)
    packed = pack_params(params)                     # pack once, reuse for all operator types

    for op_type in ("triangle", "square", "circle", "aether"):
        out = recursive_operator_forward(packed, x, op_type)
        out = jax.block_until_ready(out)
        assert out.shape == (B, D) and out.dtype == jnp.float32, op_type
        assert bool(jnp.all(jnp.isfinite(out))), op_type
    print("KERNEL_OK")
</pallas_src>

<mosaic_0001>
module attributes {stable_mosaic.version = 11 : i64} {
  func.func @_recursive_operator_kernel(%arg0: memref<8x32xf32, #tpu.memory_space<vmem>>, %arg1: memref<32x292xf32, #tpu.memory_space<vmem>>, %arg2: memref<87x96xf32, #tpu.memory_space<vmem>>, %arg3: memref<8x32xf32, #tpu.memory_space<vmem>>) attributes {dimension_semantics = [], scalar_prefetch = 0 : i64, scratch_operands = 0 : i64, tpu.core_type = #tpu.core_type<tc>} {
    %c0 = arith.constant 0 : index
    %c96 = arith.constant 96 : index
    %0 = vector.load %arg1[%c0, %c96] : memref<32x292xf32, #tpu.memory_space<vmem>>, vector<32x64xf32>
    %c68 = arith.constant 68 : index
    %c0_0 = arith.constant 0 : index
    %1 = vector.load %arg2[%c68, %c0_0] : memref<87x96xf32, #tpu.memory_space<vmem>>, vector<1x64xf32>
    %c69 = arith.constant 69 : index
    %c0_1 = arith.constant 0 : index
    %2 = vector.load %arg2[%c69, %c0_1] : memref<87x96xf32, #tpu.memory_space<vmem>>, vector<1x64xf32>
    %c0_2 = arith.constant 0 : index
    %c0_3 = arith.constant 0 : index
    %3 = vector.load %arg2[%c0_2, %c0_3] : memref<87x96xf32, #tpu.memory_space<vmem>>, vector<64x32xf32>
    %c70 = arith.constant 70 : index
    %c0_4 = arith.constant 0 : index
    %4 = vector.load %arg2[%c70, %c0_4] : memref<87x96xf32, #tpu.memory_space<vmem>>, vector<1x32xf32>
    %c71 = arith.constant 71 : index
    %c0_5 = arith.constant 0 : index
    %5 = vector.load %arg2[%c71, %c0_5] : memref<87x96xf32, #tpu.memory_space<vmem>>, vector<1x32xf32>
    %c72 = arith.constant 72 : index
    %c0_6 = arith.constant 0 : index
    %6 = vector.load %arg2[%c72, %c0_6] : memref<87x96xf32, #tpu.memory_space<vmem>>, vector<1x1xf32>
    %c0_7 = arith.constant 0 : index
    %c0_8 = arith.constant 0 : index
    %7 = vector.load %arg0[%c0_7, %c0_8] : memref<8x32xf32, #tpu.memory_space<vmem>>, vector<8x32xf32>
    %cst = arith.constant 1.000000e+00 : f32
    %8 = vector.broadcast %cst : f32 to vector<1x1xf32>
    %cst_9 = arith.constant dense<0.000000e+00> : vector<8x64xf32>
    %9 = tpu.matmul %7, %0, %cst_9 {dimension_numbers = #tpu.dot_dimension_numbers<[1], [0], [0], [1], [0, 0, 1, 1], [], []>} : vector<8x32xf32>, vector<32x64xf32>, vector<8x64xf32> -> vector<8x64xf32>
    %10 = vector.broadcast %1 : vector<1x64xf32> to vector<8x64xf32>
    %11 = arith.addf %9, %10 : vector<8x64xf32>
    %cst_10 = arith.constant 0.000000e+00 : f32
    %12 = vector.broadcast %cst_10 : f32 to vector<8x64xf32>
    %13 = arith.maximumf %11, %12 : vector<8x64xf32>
    %cst_11 = arith.constant dense<0.000000e+00> : vector<8x32xf32>
    %14 = tpu.matmul %13, %3, %cst_11 {dimension_numbers = #tpu.dot_dimension_numbers<[1], [0], [0], [1], [0, 0, 1, 1], [], []>} : vector<8x64xf32>, vector<64x32xf32>, vector<8x32xf32> -> vector<8x32xf32>
    %15 = vector.broadcast %4 : vector<1x32xf32> to vector<8x32xf32>
    %16 = arith.addf %14, %15 : vector<8x32xf32>
    %cst_12 = arith.constant 0.000000e+00 : f32
    %17 = vector.broadcast %cst_12 : f32 to vector<8x32xf32>
    %18 = arith.maximumf %16, %17 : vector<8x32xf32>
    %19 = vector.broadcast %5 : vector<1x32xf32> to vector<8x32xf32>
    %20 = arith.mulf %18, %19 : vector<8x32xf32>
    %cst_13 = arith.constant dense<0.000000e+00> : vector<8xf32>
    %21 = vector.multi_reduction <add>, %20, %cst_13 [1] : vector<8x32xf32> to vector<8xf32>
    %22 = vector.shape_cast %21 : vector<8xf32> to vector<8x1xf32>
    %23 = vector.broadcast %6 : vector<1x1xf32> to vector<8x1xf32>
    %24 = arith.addf %22, %23 : vector<8x1xf32>
    %25 = arith.negf %24 : vector<8x1xf32>
    %26 = math.exp %25 : vector<8x1xf32>
    %cst_14 = arith.constant 1.000000e+00 : f32
    %27 = vector.broadcast %cst_14 : f32 to vector<8x1xf32>
    %28 = arith.addf %27, %26 : vector<8x1xf32>
    %29 = arith.divf %27, %28 : vector<8x1xf32>
    %cst_15 = arith.constant dense<0.000000e+00> : vector<1xf32>
    %30 = vector.multi_reduction <add>, %29, %cst_15 [0] : vector<8x1xf32> to vector<1xf32>
    %31 = vector.shape_cast %30 : vector<1xf32> to vector<1x1xf32>
    %cst_16 = arith.constant 8.000000e+00 : f32
    %32 = vector.broadcast %cst_16 : f32 to vector<1x1xf32>
    %33 = arith.divf %31, %32 : vector<1x1xf32>
    %cst_17 = arith.constant 1.000000e-01 : f32
    %34 = vector.broadcast %cst_17 : f32 to vector<1x1xf32>
    %35 = arith.cmpf oge, %33, %34 : vector<1x1xf32>
    %cst_18 = arith.constant 1.000000e+00 : f32
    %cst_19 = arith.constant 0.000000e+00 : f32
    %36 = vector.broadcast %cst_18 : f32 to vector<1x1xf32>
    %37 = vector.broadcast %cst_19 : f32 to vector<1x1xf32>
    %38 = arith.select %35, %36, %37 : vector<1x1xi1>, vector<1x1xf32>
    %39 = arith.mulf %8, %38 : vector<1x1xf32>
    %c0_20 = arith.constant 0 : index
    %c0_21 = arith.constant 0 : index
    %40 = vector.load %arg1[%c0_20, %c0_21] : memref<32x292xf32, #tpu.memory_space<vmem>>, vector<32x32xf32>
    %c75 = arith.constant 75 : index
    %c0_22 = arith.constant 0 : index
    %41 = vector.load %arg2[%c75, %c0_22] : memref<87x96xf32, #tpu.memory_space<vmem>>, vector<1x32xf32>
    %c78 = arith.constant 78 : index
    %c0_23 = arith.constant 0 : index
    %42 = vector.load %arg2[%c78, %c0_23] : memref<87x96xf32, #tpu.memory_space<vmem>>, vector<1x32xf32>
    %c81 = arith.constant 81 : index
    %c0_24 = arith.constant 0 : index
    %43 = vector.load %arg2[%c81, %c0_24] : memref<87x96xf32, #tpu.memory_space<vmem>>, vector<1x32xf32>
    %c84 = arith.constant 84 : index
    %c0_25 = arith.constant 0 : index
    %44 = vector.load %arg2[%c84, %c0_25] : memref<87x96xf32, #tpu.memory_space<vmem>>, vector<1x32xf32>
    %45 = math.absf %7 : vector<8x32xf32>
    %cst_26 = arith.constant 1.000000e-01 : f32
    %cst_27 = arith.constant 3.000000e+00 : f32
    %46 = vector.broadcast %cst_26 : f32 to vector<8x32xf32>
    %47 = arith.maximumf %46, %45 : vector<8x32xf32>
    %48 = vector.broadcast %cst_27 : f32 to vector<8x32xf32>
    %49 = arith.minimumf %48, %47 : vector<8x32xf32>
    %cst_28 = arith.constant 2.000000e+00 : f32
    %50 = vector.broadcast %cst_28 : f32 to vector<8x32xf32>
    %51 = arith.minimumf %7, %50 : vector<8x32xf32>
    %cst_29 = arith.constant 9.99999993E-9 : f32
    %52 = vector.broadcast %cst_29 : f32 to vector<8x32xf32>
    %53 = arith.addf %49, %52 : vector<8x32xf32>
    %54 = math.log %53 : vector<8x32xf32>
    %55 = arith.mulf %51, %54 : vector<8x32xf32>
    %56 = math.exp %55 : vector<8x32xf32>
    %57 = vector.broadcast %41 : vector<1x32xf32> to vector<8x32xf32>
    %58 = arith.mulf %57, %56 : vector<8x32xf32>
    %cst_30 = arith.constant 1.000000e+03 : f32
    %59 = vector.broadcast %cst_30 : f32 to vector<8x32xf32>
    %60 = arith.minimumf %58, %59 : vector<8x32xf32>
    %cst_31 = arith.constant dense<0.000000e+00> : vector<8x32xf32>
    %61 = tpu.matmul %60, %40, %cst_31 {dimension_numbers = #tpu.dot_dimension_numbers<[1], [0], [0], [1], [0, 0, 1, 1], [], []>} : vector<8x32xf32>, vector<32x32xf32>, vector<8x32xf32> -> vector<8x32xf32>
    %62 = vector.broadcast %42 : vector<1x32xf32> to vector<8x32xf32>
    %63 = arith.addf %61, %62 : vector<8x32xf32>
    %cst_32 = arith.constant dense<0.000000e+00> : vector<8xf32>
    %64 = vector.multi_reduction <add>, %63, %cst_32 [1] : vector<8x32xf32> to vector<8xf32>
    %65 = vector.shape_cast %64 : vector<8xf32> to vector<8x1xf32>
    %cst_33 = arith.constant 3.200000e+01 : f32
    %66 = vector.broadcast %cst_33 : f32 to vector<8x1xf32>
    %67 = arith.divf %65, %66 : vector<8x1xf32>
    %68 = vector.broadcast %67 : vector<8x1xf32> to vector<8x32xf32>
    %69 = arith.subf %63, %68 : vector<8x32xf32>
    %70 = arith.mulf %69, %69 : vector<8x32xf32>
    %cst_34 = arith.constant dense<0.000000e+00> : vector<8xf32>
    %71 = vector.multi_reduction <add>, %70, %cst_34 [1] : vector<8x32xf32> to vector<8xf32>
    %72 = vector.shape_cast %71 : vector<8xf32> to vector<8x1xf32>
    %cst_35 = arith.constant 3.200000e+01 : f32
    %73 = vector.broadcast %cst_35 : f32 to vector<8x1xf32>
    %74 = arith.divf %72, %73 : vector<8x1xf32>
    %75 = vector.broadcast %67 : vector<8x1xf32> to vector<8x32xf32>
    %76 = arith.subf %63, %75 : vector<8x32xf32>
    %cst_36 = arith.constant 9.99999974E-6 : f32
    %77 = vector.broadcast %cst_36 : f32 to vector<8x1xf32>
    %78 = arith.addf %74, %77 : vector<8x1xf32>
    %79 = math.rsqrt %78 : vector<8x1xf32>
    %80 = vector.broadcast %79 : vector<8x1xf32> to vector<8x32xf32>
    %81 = arith.mulf %76, %80 : vector<8x32xf32>
    %82 = vector.broadcast %43 : vector<1x32xf32> to vector<8x32xf32>
    %83 = arith.mulf %81, %82 : vector<8x32xf32>
    %84 = vector.broadcast %44 : vector<1x32xf32> to vector<8x32xf32>
    %85 = arith.addf %83, %84 : vector<8x32xf32>
    %cst_37 = arith.constant 5.000000e-01 : f32
    %86 = vector.broadcast %cst_37 : f32 to vector<1x1xf32>
    %87 = arith.cmpf ogt, %39, %86 : vector<1x1xf32>
    %88 = vector.shape_cast %87 : vector<1x1xi1> to vector<1x1xi1>
    %89 = vector.broadcast %88 : vector<1x1xi1> to vector<8x32xi1>
    %90 = arith.select %89, %85, %7 : vector<8x32xi1>, vector<8x32xf32>
    %91 = math.absf %85 : vector<8x32xf32>
    %cst_38 = arith.constant 3.40282347E+38 : f32
    %92 = vector.broadcast %cst_38 : f32 to vector<8x32xf32>
    %93 = arith.cmpf ole, %91, %92 : vector<8x32xf32>
    %cst_39 = arith.constant 0.000000e+00 : f32
    %cst_40 = arith.constant 1.000000e+00 : f32
    %94 = vector.broadcast %cst_39 : f32 to vector<8x32xf32>
    %95 = vector.broadcast %cst_40 : f32 to vector<8x32xf32>
    %96 = arith.select %93, %94, %95 : vector<8x32xi1>, vector<8x32xf32>
    %cst_41 = arith.constant dense<0xFF800000> : vector<8xf32>
    %97 = vector.multi_reduction <maximumf>, %96, %cst_41 [1] : vector<8x32xf32> to vector<8xf32>
    %98 = vector.shape_cast %97 : vector<8xf32> to vector<8x1xf32>
    %cst_42 = arith.constant dense<0xFF800000> : vector<1xf32>
    %99 = vector.multi_reduction <maximumf>, %98, %cst_42 [0] : vector<8x1xf32> to vector<1xf32>
    %100 = vector.shape_cast %99 : vector<1xf32> to vector<1x1xf32>
    %cst_43 = arith.constant 1.000000e+00 : f32
    %101 = vector.broadcast %cst_43 : f32 to vector<1x1xf32>
    %102 = arith.subf %101, %100 : vector<1x1xf32>
    %103 = arith.mulf %39, %102 : vector<1x1xf32>
    %cst_44 = arith.constant dense<0.000000e+00> : vector<8x64xf32>
    %104 = tpu.matmul %90, %0, %cst_44 {dimension_numbers = #tpu.dot_dimension_numbers<[1], [0], [0], [1], [0, 0, 1, 1], [], []>} : vector<8x32xf32>, vector<32x64xf32>, vector<8x64xf32> -> vector<8x64xf32>
    %cst_45 = arith.constant 1.000000e+00 : f32
    %105 = vector.broadcast %cst_45 : f32 to vector<1x64xf32>
    %106 = arith.mulf %105, %2 : vector<1x64xf32>
    %107 = arith.addf %1, %106 : vector<1x64xf32>
    %108 = vector.broadcast %107 : vector<1x64xf32> to vector<8x64xf32>
    %109 = arith.addf %104, %108 : vector<8x64xf32>
    %cst_46 = arith.constant 0.000000e+00 : f32
    %110 = vector.broadcast %cst_46 : f32 to vector<8x64xf32>
    %111 = arith.maximumf %109, %110 : vector<8x64xf32>
    %cst_47 = arith.constant dense<0.000000e+00> : vector<8x32xf32>
    %112 = tpu.matmul %111, %3, %cst_47 {dimension_numbers = #tpu.dot_dimension_numbers<[1], [0], [0], [1], [0, 0, 1, 1], [], []>} : vector<8x64xf32>, vector<64x32xf32>, vector<8x32xf32> -> vector<8x32xf32>
    %113 = vector.broadcast %4 : vector<1x32xf32> to vector<8x32xf32>
    %114 = arith.addf %112, %113 : vector<8x32xf32>
    %cst_48 = arith.constant 0.000000e+00 : f32
    %115 = vector.broadcast %cst_48 : f32 to vector<8x32xf32>
    %116 = arith.maximumf %114, %115 : vector<8x32xf32>
    %117 = vector.broadcast %5 : vector<1x32xf32> to vector<8x32xf32>
    %118 = arith.mulf %116, %117 : vector<8x32xf32>
    %cst_49 = arith.constant dense<0.000000e+00> : vector<8xf32>
    %119 = vector.multi_reduction <add>, %118, %cst_49 [1] : vector<8x32xf32> to vector<8xf32>
    %120 = vector.shape_cast %119 : vector<8xf32> to vector<8x1xf32>
    %121 = vector.broadcast %6 : vector<1x1xf32> to vector<8x1xf32>
    %122 = arith.addf %120, %121 : vector<8x1xf32>
    %123 = arith.negf %122 : vector<8x1xf32>
    %124 = math.exp %123 : vector<8x1xf32>
    %cst_50 = arith.constant 1.000000e+00 : f32
    %125 = vector.broadcast %cst_50 : f32 to vector<8x1xf32>
    %126 = arith.addf %125, %124 : vector<8x1xf32>
    %127 = arith.divf %125, %126 : vector<8x1xf32>
    %cst_51 = arith.constant dense<0.000000e+00> : vector<1xf32>
    %128 = vector.multi_reduction <add>, %127, %cst_51 [0] : vector<8x1xf32> to vector<1xf32>
    %129 = vector.shape_cast %128 : vector<1xf32> to vector<1x1xf32>
    %cst_52 = arith.constant 8.000000e+00 : f32
    %130 = vector.broadcast %cst_52 : f32 to vector<1x1xf32>
    %131 = arith.divf %129, %130 : vector<1x1xf32>
    %cst_53 = arith.constant 1.000000e-01 : f32
    %132 = vector.broadcast %cst_53 : f32 to vector<1x1xf32>
    %133 = arith.cmpf oge, %131, %132 : vector<1x1xf32>
    %cst_54 = arith.constant 1.000000e+00 : f32
    %cst_55 = arith.constant 0.000000e+00 : f32
    %134 = vector.broadcast %cst_54 : f32 to vector<1x1xf32>
    %135 = vector.broadcast %cst_55 : f32 to vector<1x1xf32>
    %136 = arith.select %133, %134, %135 : vector<1x1xi1>, vector<1x1xf32>
    %137 = arith.mulf %103, %136 : vector<1x1xf32>
    %c0_56 = arith.constant 0 : index
    %c32 = arith.constant 32 : index
    %138 = vector.load %arg1[%c0_56, %c32] : memref<32x292xf32, #tpu.memory_space<vmem>>, vector<32x32xf32>
    %c76 = arith.constant 76 : index
    %c0_57 = arith.constant 0 : index
    %139 = vector.load %arg2[%c76, %c0_57] : memref<87x96xf32, #tpu.memory_space<vmem>>, vector<1x32xf32>
    %c79 = arith.constant 79 : index
    %c0_58 = arith.constant 0 : index
    %140 = vector.load %arg2[%c79, %c0_58] : memref<87x96xf32, #tpu.memory_space<vmem>>, vector<1x32xf32>
    %c82 = arith.constant 82 : index
    %c0_59 = arith.constant 0 : index
    %141 = vector.load %arg2[%c82, %c0_59] : memref<87x96xf32, #tpu.memory_space<vmem>>, vector<1x32xf32>
    %c85 = arith.constant 85 : index
    %c0_60 = arith.constant 0 : index
    %142 = vector.load %arg2[%c85, %c0_60] : memref<87x96xf32, #tpu.memory_space<vmem>>, vector<1x32xf32>
    %143 = math.absf %90 : vector<8x32xf32>
    %cst_61 = arith.constant 1.000000e-01 : f32
    %cst_62 = arith.constant 3.000000e+00 : f32
    %144 = vector.broadcast %cst_61 : f32 to vector<8x32xf32>
    %145 = arith.maximumf %144, %143 : vector<8x32xf32>
    %146 = vector.broadcast %cst_62 : f32 to vector<8x32xf32>
    %147 = arith.minimumf %146, %145 : vector<8x32xf32>
    %cst_63 = arith.constant 2.000000e+00 : f32
    %148 = vector.broadcast %cst_63 : f32 to vector<8x32xf32>
    %149 = arith.minimumf %90, %148 : vector<8x32xf32>
    %cst_64 = arith.constant 9.99999993E-9 : f32
    %150 = vector.broadcast %cst_64 : f32 to vector<8x32xf32>
    %151 = arith.addf %147, %150 : vector<8x32xf32>
    %152 = math.log %151 : vector<8x32xf32>
    %153 = arith.mulf %149, %152 : vector<8x32xf32>
    %154 = math.exp %153 : vector<8x32xf32>
    %155 = vector.broadcast %139 : vector<1x32xf32> to vector<8x32xf32>
    %156 = arith.mulf %155, %154 : vector<8x32xf32>
    %cst_65 = arith.constant 1.000000e+03 : f32
    %157 = vector.broadcast %cst_65 : f32 to vector<8x32xf32>
    %158 = arith.minimumf %156, %157 : vector<8x32xf32>
    %cst_66 = arith.constant dense<0.000000e+00> : vector<8x32xf32>
    %159 = tpu.matmul %158, %138, %cst_66 {dimension_numbers = #tpu.dot_dimension_numbers<[1], [0], [0], [1], [0, 0, 1, 1], [], []>} : vector<8x32xf32>, vector<32x32xf32>, vector<8x32xf32> -> vector<8x32xf32>
    %160 = vector.broadcast %140 : vector<1x32xf32> to vector<8x32xf32>
    %161 = arith.addf %159, %160 : vector<8x32xf32>
    %cst_67 = arith.constant dense<0.000000e+00> : vector<8xf32>
    %162 = vector.multi_reduction <add>, %161, %cst_67 [1] : vector<8x32xf32> to vector<8xf32>
    %163 = vector.shape_cast %162 : vector<8xf32> to vector<8x1xf32>
    %cst_68 = arith.constant 3.200000e+01 : f32
    %164 = vector.broadcast %cst_68 : f32 to vector<8x1xf32>
    %165 = arith.divf %163, %164 : vector<8x1xf32>
    %166 = vector.broadcast %165 : vector<8x1xf32> to vector<8x32xf32>
    %167 = arith.subf %161, %166 : vector<8x32xf32>
    %168 = arith.mulf %167, %167 : vector<8x32xf32>
    %cst_69 = arith.constant dense<0.000000e+00> : vector<8xf32>
    %169 = vector.multi_reduction <add>, %168, %cst_69 [1] : vector<8x32xf32> to vector<8xf32>
    %170 = vector.shape_cast %169 : vector<8xf32> to vector<8x1xf32>
    %cst_70 = arith.constant 3.200000e+01 : f32
    %171 = vector.broadcast %cst_70 : f32 to vector<8x1xf32>
    %172 = arith.divf %170, %171 : vector<8x1xf32>
    %173 = vector.broadcast %165 : vector<8x1xf32> to vector<8x32xf32>
    %174 = arith.subf %161, %173 : vector<8x32xf32>
    %cst_71 = arith.constant 9.99999974E-6 : f32
    %175 = vector.broadcast %cst_71 : f32 to vector<8x1xf32>
    %176 = arith.addf %172, %175 : vector<8x1xf32>
    %177 = math.rsqrt %176 : vector<8x1xf32>
    %178 = vector.broadcast %177 : vector<8x1xf32> to vector<8x32xf32>
    %179 = arith.mulf %174, %178 : vector<8x32xf32>
    %180 = vector.broadcast %141 : vector<1x32xf32> to vector<8x32xf32>
    %181 = arith.mulf %179, %180 : vector<8x32xf32>
    %182 = vector.broadcast %142 : vector<1x32xf32> to vector<8x32xf32>
    %183 = arith.addf %181, %182 : vector<8x32xf32>
    %cst_72 = arith.constant 5.000000e-01 : f32
    %184 = vector.broadcast %cst_72 : f32 to vector<1x1xf32>
    %185 = arith.cmpf ogt, %137, %184 : vector<1x1xf32>
    %186 = vector.shape_cast %185 : vector<1x1xi1> to vector<1x1xi1>
    %187 = vector.broadcast %186 : vector<1x1xi1> to vector<8x32xi1>
    %188 = arith.select %187, %183, %90 : vector<8x32xi1>, vector<8x32xf32>
    %189 = math.absf %183 : vector<8x32xf32>
    %cst_73 = arith.constant 3.40282347E+38 : f32
    %190 = vector.broadcast %cst_73 : f32 to vector<8x32xf32>
    %191 = arith.cmpf ole, %189, %190 : vector<8x32xf32>
    %cst_74 = arith.constant 0.000000e+00 : f32
    %cst_75 = arith.constant 1.000000e+00 : f32
    %192 = vector.broadcast %cst_74 : f32 to vector<8x32xf32>
    %193 = vector.broadcast %cst_75 : f32 to vector<8x32xf32>
    %194 = arith.select %191, %192, %193 : vector<8x32xi1>, vector<8x32xf32>
    %cst_76 = arith.constant dense<0xFF800000> : vector<8xf32>
    %195 = vector.multi_reduction <maximumf>, %194, %cst_76 [1] : vector<8x32xf32> to vector<8xf32>
    %196 = vector.shape_cast %195 : vector<8xf32> to vector<8x1xf32>
    %cst_77 = arith.constant dense<0xFF800000> : vector<1xf32>
    %197 = vector.multi_reduction <maximumf>, %196, %cst_77 [0] : vector<8x1xf32> to vector<1xf32>
    %198 = vector.shape_cast %197 : vector<1xf32> to vector<1x1xf32>
    %cst_78 = arith.constant 1.000000e+00 : f32
    %199 = vector.broadcast %cst_78 : f32 to vector<1x1xf32>
    %200 = arith.subf %199, %198 : vector<1x1xf32>
    %201 = arith.mulf %137, %200 : vector<1x1xf32>
    %cst_79 = arith.constant dense<0.000000e+00> : vector<8x64xf32>
    %202 = tpu.matmul %188, %0, %cst_79 {dimension_numbers = #tpu.dot_dimension_numbers<[1], [0], [0], [1], [0, 0, 1, 1], [], []>} : vector<8x32xf32>, vector<32x64xf32>, vector<8x64xf32> -> vector<8x64xf32>
    %cst_80 = arith.constant 2.000000e+00 : f32
    %203 = vector.broadcast %cst_80 : f32 to vector<1x64xf32>
    %204 = arith.mulf %203, %2 : vector<1x64xf32>
    %205 = arith.addf %1, %204 : vector<1x64xf32>
    %206 = vector.broadcast %205 : vector<1x64xf32> to vector<8x64xf32>
    %207 = arith.addf %202, %206 : vector<8x64xf32>
    %cst_81 = arith.constant 0.000000e+00 : f32
    %208 = vector.broadcast %cst_81 : f32 to vector<8x64xf32>
    %209 = arith.maximumf %207, %208 : vector<8x64xf32>
    %cst_82 = arith.constant dense<0.000000e+00> : vector<8x32xf32>
    %210 = tpu.matmul %209, %3, %cst_82 {dimension_numbers = #tpu.dot_dimension_numbers<[1], [0], [0], [1], [0, 0, 1, 1], [], []>} : vector<8x64xf32>, vector<64x32xf32>, vector<8x32xf32> -> vector<8x32xf32>
    %211 = vector.broadcast %4 : vector<1x32xf32> to vector<8x32xf32>
    %212 = arith.addf %210, %211 : vector<8x32xf32>
    %cst_83 = arith.constant 0.000000e+00 : f32
    %213 = vector.broadcast %cst_83 : f32 to vector<8x32xf32>
    %214 = arith.maximumf %212, %213 : vector<8x32xf32>
    %215 = vector.broadcast %5 : vector<1x32xf32> to vector<8x32xf32>
    %216 = arith.mulf %214, %215 : vector<8x32xf32>
    %cst_84 = arith.constant dense<0.000000e+00> : vector<8xf32>
    %217 = vector.multi_reduction <add>, %216, %cst_84 [1] : vector<8x32xf32> to vector<8xf32>
    %218 = vector.shape_cast %217 : vector<8xf32> to vector<8x1xf32>
    %219 = vector.broadcast %6 : vector<1x1xf32> to vector<8x1xf32>
    %220 = arith.addf %218, %219 : vector<8x1xf32>
    %221 = arith.negf %220 : vector<8x1xf32>
    %222 = math.exp %221 : vector<8x1xf32>
    %cst_85 = arith.constant 1.000000e+00 : f32
    %223 = vector.broadcast %cst_85 : f32 to vector<8x1xf32>
    %224 = arith.addf %223, %222 : vector<8x1xf32>
    %225 = arith.divf %223, %224 : vector<8x1xf32>
    %cst_86 = arith.constant dense<0.000000e+00> : vector<1xf32>
    %226 = vector.multi_reduction <add>, %225, %cst_86 [0] : vector<8x1xf32> to vector<1xf32>
    %227 = vector.shape_cast %226 : vector<1xf32> to vector<1x1xf32>
    %cst_87 = arith.constant 8.000000e+00 : f32
    %228 = vector.broadcast %cst_87 : f32 to vector<1x1xf32>
    %229 = arith.divf %227, %228 : vector<1x1xf32>
    %cst_88 = arith.constant 1.000000e-01 : f32
    %230 = vector.broadcast %cst_88 : f32 to vector<1x1xf32>
    %231 = arith.cmpf oge, %229, %230 : vector<1x1xf32>
    %cst_89 = arith.constant 1.000000e+00 : f32
    %cst_90 = arith.constant 0.000000e+00 : f32
    %232 = vector.broadcast %cst_89 : f32 to vector<1x1xf32>
    %233 = vector.broadcast %cst_90 : f32 to vector<1x1xf32>
    %234 = arith.select %231, %232, %233 : vector<1x1xi1>, vector<1x1xf32>
    %235 = arith.mulf %201, %234 : vector<1x1xf32>
    %c0_91 = arith.constant 0 : index
    %c64 = arith.constant 64 : index
    %236 = vector.load %arg1[%c0_91, %c64] : memref<32x292xf32, #tpu.memory_space<vmem>>, vector<32x32xf32>
    %c77 = arith.constant 77 : index
    %c0_92 = arith.constant 0 : index
    %237 = vector.load %arg2[%c77, %c0_92] : memref<87x96xf32, #tpu.memory_space<vmem>>, vector<1x32xf32>
    %c80 = arith.constant 80 : index
    %c0_93 = arith.constant 0 : index
    %238 = vector.load %arg2[%c80, %c0_93] : memref<87x96xf32, #tpu.memory_space<vmem>>, vector<1x32xf32>
    %c83 = arith.constant 83 : index
    %c0_94 = arith.constant 0 : index
    %239 = vector.load %arg2[%c83, %c0_94] : memref<87x96xf32, #tpu.memory_space<vmem>>, vector<1x32xf32>
    %c86 = arith.constant 86 : index
    %c0_95 = arith.constant 0 : index
    %240 = vector.load %arg2[%c86, %c0_95] : memref<87x96xf32, #tpu.memory_space<vmem>>, vector<1x32xf32>
    %241 = math.absf %188 : vector<8x32xf32>
    %cst_96 = arith.constant 1.000000e-01 : f32
    %cst_97 = arith.constant 3.000000e+00 : f32
    %242 = vector.broadcast %cst_96 : f32 to vector<8x32xf32>
    %243 = arith.maximumf %242, %241 : vector<8x32xf32>
    %244 = vector.broadcast %cst_97 : f32 to vector<8x32xf32>
    %245 = arith.minimumf %244, %243 : vector<8x32xf32>
    %cst_98 = arith.constant 2.000000e+00 : f32
    %246 = vector.broadcast %cst_98 : f32 to vector<8x32xf32>
    %247 = arith.minimumf %188, %246 : vector<8x32xf32>
    %cst_99 = arith.constant 9.99999993E-9 : f32
    %248 = vector.broadcast %cst_99 : f32 to vector<8x32xf32>
    %249 = arith.addf %245, %248 : vector<8x32xf32>
    %250 = math.log %249 : vector<8x32xf32>
    %251 = arith.mulf %247, %250 : vector<8x32xf32>
    %252 = math.exp %251 : vector<8x32xf32>
    %253 = vector.broadcast %237 : vector<1x32xf32> to vector<8x32xf32>
    %254 = arith.mulf %253, %252 : vector<8x32xf32>
    %cst_100 = arith.constant 1.000000e+03 : f32
    %255 = vector.broadcast %cst_100 : f32 to vector<8x32xf32>
    %256 = arith.minimumf %254, %255 : vector<8x32xf32>
    %cst_101 = arith.constant dense<0.000000e+00> : vector<8x32xf32>
    %257 = tpu.matmul %256, %236, %cst_101 {dimension_numbers = #tpu.dot_dimension_numbers<[1], [0], [0], [1], [0, 0, 1, 1], [], []>} : vector<8x32xf32>, vector<32x32xf32>, vector<8x32xf32> -> vector<8x32xf32>
    %258 = vector.broadcast %238 : vector<1x32xf32> to vector<8x32xf32>
    %259 = arith.addf %257, %258 : vector<8x32xf32>
    %cst_102 = arith.constant dense<0.000000e+00> : vector<8xf32>
    %260 = vector.multi_reduction <add>, %259, %cst_102 [1] : vector<8x32xf32> to vector<8xf32>
    %261 = vector.shape_cast %260 : vector<8xf32> to vector<8x1xf32>
    %cst_103 = arith.constant 3.200000e+01 : f32
    %262 = vector.broadcast %cst_103 : f32 to vector<8x1xf32>
    %263 = arith.divf %261, %262 : vector<8x1xf32>
    %264 = vector.broadcast %263 : vector<8x1xf32> to vector<8x32xf32>
    %265 = arith.subf %259, %264 : vector<8x32xf32>
    %266 = arith.mulf %265, %265 : vector<8x32xf32>
    %cst_104 = arith.constant dense<0.000000e+00> : vector<8xf32>
    %267 = vector.multi_reduction <add>, %266, %cst_104 [1] : vector<8x32xf32> to vector<8xf32>
    %268 = vector.shape_cast %267 : vector<8xf32> to vector<8x1xf32>
    %cst_105 = arith.constant 3.200000e+01 : f32
    %269 = vector.broadcast %cst_105 : f32 to vector<8x1xf32>
    %270 = arith.divf %268, %269 : vector<8x1xf32>
    %271 = vector.broadcast %263 : vector<8x1xf32> to vector<8x32xf32>
    %272 = arith.subf %259, %271 : vector<8x32xf32>
    %cst_106 = arith.constant 9.99999974E-6 : f32
    %273 = vector.broadcast %cst_106 : f32 to vector<8x1xf32>
    %274 = arith.addf %270, %273 : vector<8x1xf32>
    %275 = math.rsqrt %274 : vector<8x1xf32>
    %276 = vector.broadcast %275 : vector<8x1xf32> to vector<8x32xf32>
    %277 = arith.mulf %272, %276 : vector<8x32xf32>
    %278 = vector.broadcast %239 : vector<1x32xf32> to vector<8x32xf32>
    %279 = arith.mulf %277, %278 : vector<8x32xf32>
    %280 = vector.broadcast %240 : vector<1x32xf32> to vector<8x32xf32>
    %281 = arith.addf %279, %280 : vector<8x32xf32>
    %cst_107 = arith.constant 5.000000e-01 : f32
    %282 = vector.broadcast %cst_107 : f32 to vector<1x1xf32>
    %283 = arith.cmpf ogt, %235, %282 : vector<1x1xf32>
    %284 = vector.shape_cast %283 : vector<1x1xi1> to vector<1x1xi1>
    %285 = vector.broadcast %284 : vector<1x1xi1> to vector<8x32xi1>
    %286 = arith.select %285, %281, %188 : vector<8x32xi1>, vector<8x32xf32>
    %c0_108 = arith.constant 0 : index
    %c0_109 = arith.constant 0 : index
    %287 = vector.load %arg3[%c0_108, %c0_109] : memref<8x32xf32, #tpu.memory_space<vmem>>, vector<8x32xf32>
    tpu.vector_store %arg3[%c0_108, %c0_109], %286 {strides = array<i32>} : memref<8x32xf32, #tpu.memory_space<vmem>>, vector<8x32xf32>,
    return
  }
}

</mosaic_0001>

<bundles_post_ra>
// kernel: tpu_custom_call.1
= control target key start
LH: loop header
LB: loop body
LE: loop exit
PB: predicated region body
PF: predicated region fallthrough
CT: control target
= control target key end

     0   :  { %8 = vsyncpa [#allocation3], 0  ;;  %s1851_s0 = inlined_call_operand.hbm [shape: f32[8,32], index: 0, kind: input, shape index: {}]   ;;  %s1852_s1 = inlined_call_operand.hbm [shape: f32[32,292], index: 1, kind: input, shape index: {}]   ;;  %s1853_s2 = inlined_call_operand.hbm [shape: f32[87,96], index: 2, kind: input, shape index: {}]   ;;  %s1854_s3 = inlined_call_operand.hbm [shape: f32[8,32], index: 3, kind: output, shape index: {}]  }
   0x1   :  { %9 = vsyncpa [#allocation6], 0 }
   0x2   :  { %10 = vsyncpa [#allocation4], 0  ;;  %s1568_s12 = smov [#allocation5]   ;;  %s1474_s16 = scalar_lea.hbm %s1852_s1, 1536 }
   0x3   :  { %s26_s13 = sshll.u32 %s1568_s12, 4  ;;  %p1475_p0 = scmp.ne.s32.totalorder %s1852_s1, %s1474_s16  ;;  %s27_s13 = int_to_ptr.vmem [resolvable:$true] %s26_s13 }
   0x4   :  { %p1478_p1 = scmp.lt.u32.totalorder %s1474_s16, %s1852_s1 }
   0x6   :  { %p1480_p2 = pnand %p1478_p1, %p1475_p0 }
   0x8   :  { %1483 = shalt.err (!%p1480_p2)
}
   0x9   :  { %s1484_s21 = scalar_lea.vmem %s27_s13, 1536  ;;  %p1489_p4 = scmp.lt.s32.totalorder %s27_s13, %s27_s13 }
   0xa   :  { %p1485_p3 = scmp.ne.s32.totalorder %s27_s13, %s1484_s21  ;;  %p1490_p5 = scmp.lt.s32.totalorder %s1484_s21, %s1484_s21 }
   0xc   :  { %p1491_p6 = por %p1490_p5, %p1489_p4 }
   0xe   :  { %p1492_p7 = pnand %p1491_p6, %p1485_p3 }
  0x10   :  { %1495 = shalt.err (!%p1492_p7)
}
  0x11   :  { %s1569_s22 = smov 384   ;;  %s1570_s23 = smov 24  }
  0x12   :  { %32 = dma.hbm_to_vmem [thread:$0]  %s1852_s1, 1536, %s27_s13, [#allocation6], %s1569_s22, %s1569_s22, %s1570_s23  }
  0x13   :  { %s1571_s26 = smov [#allocation2]   ;;  %s1572_s28 = smov [#allocation7]  }
  0x14   :  { %s17_s27 = sshll.u32 %s1571_s26, 4  ;;  %s38_s29 = sshll.u32 %s1572_s28, 4  ;;  %s18_s27 = int_to_ptr.vmem [resolvable:$true] %s17_s27  ;;  %s39_s29 = int_to_ptr.vmem [resolvable:$true] %s38_s29 }
  0x15   :  { %s1496_s5 = scalar_lea.hbm %s1851_s0, 128 }
  0x16   :  { %p1497_p8 = scmp.ne.s32.totalorder %s1851_s0, %s1496_s5  ;;  %p1500_p9 = scmp.lt.u32.totalorder %s1496_s5, %s1851_s0 }
  0x18   :  { %p1502_p10 = pnand %p1500_p9, %p1497_p8 }
  0x1a   :  { %1505 = shalt.err (!%p1502_p10)
}
  0x1b   :  { %s1506_s1 = scalar_lea.vmem %s18_s27, 128  ;;  %p1511_p12 = scmp.lt.s32.totalorder %s18_s27, %s18_s27 }
  0x1c   :  { %p1507_p11 = scmp.ne.s32.totalorder %s18_s27, %s1506_s1  ;;  %p1512_p13 = scmp.lt.s32.totalorder %s1506_s1, %s1506_s1 }
  0x1e   :  { %p1513_p0 = por %p1512_p13, %p1511_p12 }
  0x20   :  { %p1514_p1 = pnand %p1513_p0, %p1507_p11 }
  0x22   :  { %1517 = shalt.err (!%p1514_p1)
}
  0x23   :  { %20 = dma.hbm_to_vmem [thread:$0]  %s1851_s0, 128, %s18_s27, [#allocation3]  }
  0x24   :  { %s1518_s14 = scalar_lea.hbm %s1853_s2, 1408 }
  0x25   :  { %p1519_p2 = scmp.ne.s32.totalorder %s1853_s2, %s1518_s14  ;;  %p1522_p3 = scmp.lt.u32.totalorder %s1518_s14, %s1853_s2 }
  0x27   :  { %p1524_p4 = pnand %p1522_p3, %p1519_p2 }
  0x29   :  { %1527 = shalt.err (!%p1524_p4)
}
  0x2a   :  { %s1528_s19 = scalar_lea.vmem %s39_s29, 1408  ;;  %p1533_p6 = scmp.lt.s32.totalorder %s39_s29, %s39_s29 }
  0x2b   :  { %p1529_p5 = scmp.ne.s32.totalorder %s39_s29, %s1528_s19  ;;  %p1534_p7 = scmp.lt.s32.totalorder %s1528_s19, %s1528_s19 }
  0x2d   :  { %p1535_p8 = por %p1534_p7, %p1533_p6 }
  0x2f   :  { %p1536_p9 = pnand %p1535_p8, %p1529_p5 }
  0x31   :  { %1539 = shalt.err (!%p1536_p9)
}
  0x32   :  { %s1573_s0 = smov 128   ;;  %s1574_s20 = smov 8  }
  0x33   :  { %44 = dma.hbm_to_vmem [thread:$0]  %s1853_s2, 1408, %s39_s29, [#allocation6], %s1573_s0, %s1573_s0, %s1574_s20  }
  0x34   :  { %1562 = dma.done.wait [#allocation3], 128  }
  0x35   :  { %1563 = vsyncadd [#allocation3], 4294967168 }
  0x36   :  { %1564 = dma.done.wait [#allocation6], 2944  }
  0x37   :  { %1565 = vsyncadd [#allocation6], 4294964352  ;;  %v1575_v0 = vmov 0.0|0.0   ;;  %v1642_v1 = vld [vmem:[#allocation5 + $0x30] sm:$0xff]  ;;  %v59_v2 = vld [vmem:[#allocation5 + $0x38] sm:$0xff]  ;;  %s1576_s2 = smov 32   ;;  %v76_v60 = vlaneseq }
  0x38   :  { %1314 = vmatprep.subr.bf16.mxu0 %v1575_v0  ;;  %1320 = vmatprep.subr.bf16.mxu1 %v1575_v0  ;;  %v1644_v3 = vld [vmem:[#allocation5] sm:$0xff]  ;;  %v1412_v4 = vpack.i.bf16 %v59_v2, %v1642_v1  ;;  %v55_v5 = vld [vmem:[#allocation5 + $0x8] sm:$0xff]  ;;  %v61_v7 = vld [vmem:[#allocation5 + $0x50] sm:$0xff]  ;;  %vm1577_vm0 = vmmov 0   ;;  %v1578_v13 = vmov 0.0   ;;  %vm104_vm1 = vcmask 261120  }
  0x39   :  { %v1647_v6 = vld [vmem:[#allocation5 + $0x48] sm:$0xff]  ;;  %v1402_v8 = vpack.i.bf16 %v55_v5, %v1644_v3  ;;  %v1650_v9 = vld [vmem:[#allocation5 + $0x18] sm:$0xff]  ;;  %v57_v10 = vld [vmem:[#allocation5 + $0x20] sm:$0xff]  ;;  %1199 = vmatprep.mubr.msk.f32.mxu0 %vm1577_vm0, %v1578_v13  ;;  %1218 = vmatprep.mubr.msk.f32.mxu1 %vm1577_vm0, %v1578_v13  ;;  %v77_v61 = vshrl.u32 %v76_v60, 7  ;;  %vm191_vm2 = vcmask 523264   ;;  %s1580_s23 = smov 96  }
  0x3a   :  { %1413 = vrot.lane.b32.xlu1 %v1412_v4, %s1576_s2  ;;  %v1417_v11 = vpack.i.bf16 %v61_v7, %v1647_v6  ;;  %v1407_v12 = vpack.i.bf16 %v57_v10, %v1650_v9  ;;  %v64_v14 = vld [vmem:[#allocation7] sm:$0xff]  ;;  %v65_v15 = vld [vmem:[#allocation7 + $0x8] sm:$0xff]  ;;  %v66_v16 = vld [vmem:[#allocation7 + $0x10] sm:$0xff]  ;;  %v1333_v52 = vpack.c.bf16 %v1650_v9, %v1644_v3  ;;  %v1336_v55 = vpack.c.bf16 %v1647_v6, %v1642_v1  ;;  %s1582_s24 = smov 64   ;;  %s1583_s25 = smov [#allocation8]  }
  0x3b   :  { %1403 = vrot.lane.b32.xlu0 %v1402_v8, %s1576_s2  ;;  %v1658_v17 = vpack.c.bf16 %v65_v15, %v64_v14  ;;  %v67_v18 = vld [vmem:[#allocation7 + $0x18] sm:$0xff]  ;;  %v68_v20 = vld [vmem:[#allocation7 + $0x20] sm:$0xff]  ;;  %v69_v21 = vld [vmem:[#allocation7 + $0x28] sm:$0xff]  ;;  %v1707_v62 = vsub.s32 0, %v77_v61  ;;  %vm285_vm3 = vcmask 7168   ;;  %s1097_s26 = sshll.u32 %s1583_s25, 4  ;;  %s1098_s26 = int_to_ptr.vmem [resolvable:$true] %s1097_s26 }
  0x3c   :  { %v1661_v19 = vpack.c.bf16 %v67_v18, %v66_v16  ;;  %v1665_v22 = vpack.c.bf16 %v69_v21, %v68_v20  ;;  %v1670_v23 = vld [vmem:[#allocation2] sm:$0xff]  ;;  %v1113_v53 = vld [vmem:[#allocation7 + $0x4b] ss:$0 sm:$0xff]  ;;  %v70_v57 = vld [vmem:[#allocation7 + $0x30] sm:$0xff]  ;;  %s1540_s27 = scalar_lea.vmem %s1098_s26, 128  ;;  %p1545_p11 = scmp.lt.s32.totalorder %s1098_s26, %s1098_s26 }
  0x3d   :  { %1322 = vmatpush3.bf16.msra.mxu1 %v1658_v17  ;;  %v305_v24 = vand.u32 2147483647, %v1670_v23  ;;  %v308_v29 = vmin.f32 %v1670_v23, 2.0  ;;  %v71_v58 = vld [vmem:[#allocation7 + $0x38] sm:$0xff]  ;;  %v1709_v63 = vld [vmem:[#allocation7 + $0x44] sm:$0x1]  ;;  %p1541_p10 = scmp.ne.s32.totalorder %s1098_s26, %s1540_s27  ;;  %p1546_p12 = scmp.lt.s32.totalorder %s1540_s27, %s1540_s27 }
  0x3e   :  { %1418 = vrot.lane.b32.xlu1 %v1417_v11, %s1576_s2  ;;  %1323 = vmatprep.subr.bf16.mxu1 %v1575_v0  ;;  %v1703_v59 = vpack.c.bf16 %v71_v58, %v70_v57  ;;  %v79_v2 = vrot.slane %v1709_v63, %v1707_v62  ;;  %v1114_v10 = vld [vmem:[#allocation7 + $0x4e] ss:$0 sm:$0xff]  ;;  %v1725_v20 = vld [vmem:[#allocation7 + $0x46] ss:$0 sm:$0xff]  ;;  %v1116_v57 = vld [vmem:[#allocation7 + $0x51] ss:$0 sm:$0xff] }
  0x3f   :  { %1408 = vrot.lane.b32.xlu0 %v1407_v12, %s1576_s2  ;;  %v306_v25 = vmax.f32 %v305_v24, 0.1  ;;  %p1547_p13 = por %p1546_p12, %p1545_p11 }
  0x41   :  { %1325 = vmatpush3.bf16.msra.mxu1 %v1661_v19  ;;  %v307_v26 = vmin.f32 %v306_v25, 3.0  ;;  %p1548_p0 = pnand %p1547_p13, %p1541_p10 }
  0x42   :  { %1326 = vmatprep.subr.bf16.mxu1 %v1575_v0 }
  0x43   :  { %v309_v27 = vadd.f32 1e-08, %v307_v26 }
  0x45   :  { %1328 = vmatpush3.bf16.msra.mxu1 %v1665_v22  ;;  %1444 = vlog2.f32 %v309_v27  ;;  %v1728_v27 = vld [vmem:[#allocation7 + $0x47] ss:$0 sm:$0xff] }
  0x46   :  { %1329 = vmatprep.subr.bf16.mxu1 %v1575_v0 }
  0x49   :  { %1331 = vmatpush3.bf16.msra.mxu1 %v1703_v59 }
  0x4a   :  { %1344 = vmatprep.subr.bf16.mxu1 %v1575_v0 }
  0x4f   :  { %v1445_v28 = vpop.eup %1444 }
  0x50   :  { %v311_v30 = vmul.f32 0.6931472, %v1445_v28 }
  0x52   :  { %v312_v31 = vmul.f32 %v311_v30, %v308_v29 }
  0x54   :  { %v313_v34 = vmul.f32 1.442695, %v312_v31 }
  0x56   :  { %1446 = vpow2.f32 %v313_v34  ;;  %v1737_v34 = vpack.i.bf16 %v1650_v9, %v1644_v3 }
  0x60   :  { %v1447_v51 = vpop.eup %1446 }
  0x61   :  { %v319_v54 = vmul.f32 %v1447_v51, %v1113_v53 }
  0x63   :  { %v320_v56 = vmin.f32 %v319_v54, 1000.0 }
  0xac   :  { %v1414_v32 = vpop.permute.xlu1 %1413 }
  0xad   :  { %v1404_v33 = vpop.permute.xlu0 %1403  ;;  %v1416_v38 = vunpack.i.h.bf16 %v1414_v32  ;;  %v1415_v39 = vunpack.i.l.bf16 %v1414_v32 }
  0xae   :  { %v1406_v35 = vunpack.i.h.bf16 %v1404_v33  ;;  %v1405_v36 = vunpack.i.l.bf16 %v1404_v33  ;;  %v1579_v33 = vmov 0  }
  0xaf   :  { %v107_v48 = vsel %vm104_vm1, %v1415_v39, %v1416_v38  ;;  %1422 = vset.pattern.permute.xlu0 %v1579_v33  ;;  %1433 = vset.pattern.permute.xlu1 %v1579_v33 }
  0xb0   :  { %v1419_v37 = vpop.permute.xlu1 %1418  ;;  %v105_v45 = vsel %vm104_vm1, %v1405_v36, %v1406_v35  ;;  %v1742_v35 = vpack.i.bf16 %v1647_v6, %v1642_v1  ;;  %v1745_v36 = vld [vmem:[#allocation7 + $0x48] ss:$0 sm:$0xff] }
  0xb1   :  { %v1409_v40 = vpop.permute.xlu0 %1408  ;;  %v1421_v41 = vunpack.i.h.bf16 %v1419_v37  ;;  %v1420_v42 = vunpack.i.l.bf16 %v1419_v37 }
  0xb2   :  { %v1411_v43 = vunpack.i.h.bf16 %v1409_v40  ;;  %v1410_v44 = vunpack.i.l.bf16 %v1409_v40 }
  0xb3   :  { %v108_v49 = vsel %vm104_vm1, %v1420_v42, %v1421_v41 }
  0xb4   :  { %v106_v46 = vsel %vm104_vm1, %v1410_v44, %v1411_v43  ;;  %v1682_v50 = vpack.c.bf16 %v108_v49, %v107_v48 }
  0xb5   :  { %v1676_v47 = vpack.c.bf16 %v106_v46, %v105_v45 }
  0xb7   :  { %1316 = vmatpush3.bf16.msra.mxu0 %v1676_v47 }
  0xb8   :  { %1317 = vmatprep.subr.bf16.mxu0 %v1575_v0 }
  0xbb   :  { %1319 = vmatpush3.bf16.msra.mxu0 %v1682_v50 }
  0xbc   :  { %1332 = vmatprep.subr.bf16.mxu0 %v1575_v0 }
  0xbe   :  { %1200 = vmatmul.mubr.msk.f32.vlgmr.msra.gmra.mrb[0].mxu0 %vm104_vm1, %v1670_v23 }
  0xbf   :  { %1334 = vmatpush3.bf16.msra.mxu0 %v1333_v52  ;;  %1229 = vmatprep.mubr.msk.f32.mxu0 %vm1577_vm0, %v1578_v13 }
  0xc0   :  { %1335 = vmatprep.subr.bf16.mxu0 %v1575_v0 }
  0xc3   :  { %1337 = vmatpush3.bf16.msra.mxu0 %v1336_v55 }
  0xc4   :  { %1338 = vmatprep.subr.bf16.mxu0 %v1575_v0 }
  0xc6   :  { %1230 = vmatmul.mubr.msk.f32.vlgmr.msra.gmra.mrb[2].mxu0 %vm104_vm1, %v320_v56 }
  0xc7   :  { %1340 = vmatpush3.bf16.msra.mxu0 %v1676_v47  ;;  %1240 = vmatprep.mubr.msk.f32.mxu0 %vm1577_vm0, %v1578_v13 }
  0xc8   :  { %1341 = vmatprep.subr.bf16.mxu0 %v1575_v0 }
  0xcb   :  { %1343 = vmatpush3.bf16.msra.mxu0 %v1682_v50 }
  0xcc   :  { %1356 = vmatprep.subr.bf16.mxu0 %v1575_v0 }
 0x191   :  { %v182_v4 = vpop.f32.mrb[0].mxu0 }
 0x192   :  { %v183_v5 = vadd.f32 %v182_v4, %v79_v2  ;;  %v1201_v7 = vpop.f32.mrb[1].mxu0  ;;  %v1117_v2 = vld [vmem:[#allocation7 + $0x54] ss:$0 sm:$0xff] }
 0x194   :  { %v186_v8 = vmax.f32 %v183_v5, 0.0 }
 0x196   :  { %1219 = vmatmul.mubr.msk.f32.vlgmr.msra.gmra.mrb[0].mxu1 %vm191_vm2, %v186_v8 }
 0x197   :  { %1346 = vmatpush3.bf16.msra.mxu1 %v1658_v17  ;;  %1259 = vmatprep.mubr.msk.f32.mxu1 %vm1577_vm0, %v1578_v13 }
 0x198   :  { %1347 = vmatprep.subr.bf16.mxu1 %v1575_v0 }
 0x199   :  { %v394_v11 = vpop.f32.mrb[2].mxu0 }
 0x19a   :  { %v395_v12 = vadd.f32 %v1114_v10, %v394_v11  ;;  %v1231_v14 = vpop.f32.mrb[3].mxu0 }
 0x19b   :  { %1349 = vmatpush3.bf16.msra.mxu1 %v1661_v19 }
 0x19c   :  { %v398_v15 = vsel %vm104_vm1, %v395_v12, 0.0  ;;  %1350 = vmatprep.subr.bf16.mxu1 %v1575_v0 }
 0x19d   :  { %399 = vadd.xlane.f32.xlu1 %v398_v15 }
 0x19f   :  { %1352 = vmatpush3.bf16.msra.mxu1 %v1665_v22 }
 0x1a0   :  { %1353 = vmatprep.subr.bf16.mxu1 %v1575_v0 }
 0x1a3   :  { %1355 = vmatpush3.bf16.msra.mxu1 %v1703_v59 }
 0x1a4   :  { %1368 = vmatprep.subr.bf16.mxu1 %v1575_v0 }
 0x1ae   :  { %1424 = vrot.lane.b32.xlu1 %v1737_v34, %s1580_s23 }
 0x1b2   :  { %1429 = vrot.lane.b32.xlu1 %v1742_v35, %s1580_s23 }
 0x22a   :  { %v400_v16 = vpop.xlane.xlu1 %399 }
 0x22b   :  { %v402_v18 = vmul.f32 0.03125, %v400_v16 }
 0x22d   :  { %v403_v26 = vsub.f32 %v395_v12, %v402_v18 }
 0x22e   :  { %v1425_v55 = vpop.permute.xlu1 %1424 }
 0x22f   :  { %v404_v30 = vmul.f32 %v403_v26, %v403_v26  ;;  %v1427_v60 = vunpack.i.h.bf16 %v1425_v55  ;;  %v1426_v61 = vunpack.i.l.bf16 %v1425_v55 }
 0x231   :  { %v405_v32 = vsel %vm104_vm1, %v404_v30, 0.0  ;;  %v1357_v8 = vpack.c.bf16 %v1427_v60, %v1426_v61 }
 0x232   :  { %v1430_v4 = vpop.permute.xlu1 %1429 }
 0x233   :  { %v1432_v10 = vunpack.i.h.bf16 %v1430_v4  ;;  %v1431_v11 = vunpack.i.l.bf16 %v1430_v4 }
 0x235   :  { %v1360_v15 = vpack.c.bf16 %v1432_v10, %v1431_v11 }
 0x269   :  { %v261_v21 = vpop.f32.mrb[0].mxu1 }
 0x26a   :  { %v262_v24 = vadd.f32 %v1725_v20, %v261_v21  ;;  %v1220_v25 = vpop.f32.mrb[1].mxu1 }
 0x26c   :  { %v265_v28 = vmax.f32 %v262_v24, 0.0 }
 0x26e   :  { %v270_v29 = vmul.f32 %v1728_v27, %v265_v28 }
 0x270   :  { %v271_v31 = vsel %vm104_vm1, %v270_v29, 0.0  ;;  %v1121_v29 = vld [vmem:[#allocation7 + $0x4c] ss:$0 sm:$0xff] }
 0x271   :  { %272 = vadd.xlane.f32.xlu0 %v271_v31 }
 0x275   :  { %406 = vadd.xlane.f32.xlu0 %v405_v32 }
 0x2fe   :  { %v273_v37 = vpop.xlane.xlu0 %272 }
 0x2ff   :  { %v278_v38 = vadd.f32 %v1745_v36, %v273_v37  ;;  %v1775_v37 = vld [vmem:[#allocation7 + $0x45] sm:$0x1] }
 0x301   :  { %v1112_v39 = vmul.f32 -1.442695, %v278_v38  ;;  %v443_v38 = vadd.f32 %v1775_v37, %v1709_v63 }
 0x302   :  { %v407_v51 = vpop.xlane.xlu0 %406 }
 0x303   :  { %1448 = vpow2.f32 %v1112_v39  ;;  %v408_v52 = vmul.f32 0.03125, %v407_v51  ;;  %v447_v39 = vrot.slane %v443_v38, %v1707_v62 }
 0x305   :  { %v409_v53 = vadd.f32 1e-05, %v408_v52  ;;  %v1581_v52 = vmov 1.0  }
 0x30d   :  { %v1449_v40 = vpop.eup %1448 }
 0x30e   :  { %v282_v41 = vadd.f32 1.0, %v1449_v40 }
 0x310   :  { %1450 = vrcp.f32 %v282_v41 }
 0x311   :  { %1452 = vrsqrt.f32 %v409_v53 }
 0x31a   :  { %v1451_v3 = vpop.eup %1450 }
 0x31b   :  { %v286_v9 = vsel %vm285_vm3, %v1451_v3, 0.0  ;;  %v1453_v54 = vpop.eup %1452 }
 0x31c   :  { %v287_v42 = vrot.slane %v286_v9, 4  ;;  %v411_v56 = vmul.f32 %v1453_v54, %v403_v26 }
 0x31e   :  { %v288_v43 = vadd.f32 %v287_v42, %v286_v9  ;;  %v416_v58 = vmul.f32 %v1116_v57, %v411_v56 }
 0x320   :  { %v289_v1 = vrot.slane %v288_v43, 2  ;;  %v1754_v5 = vadd.f32 %v1117_v2, %v416_v58 }
 0x322   :  { %v290_v6 = vadd.f32 %v289_v1, %v288_v43 }
 0x324   :  { %v291_v44 = vrot.slane %v290_v6, 1 }
 0x326   :  { %v292_v45 = vadd.f32 %v291_v44, %v290_v6 }
 0x328   :  { %v294_v46 = vmul.f32 0.125, %v292_v45  ;;  %v429_v45 = vand.u32 2147483647, %v1754_v5 }
 0x32a   :  { %vm295_vm4 = vcmp.ge.f32.partialorder %v294_v46, 0.1  ;;  %vm430_vm7 = vcmp.le.f32.partialorder %v429_v45, 3.4028235e+38 }
 0x32b   :  { %v1750_v48 = vsel %vm295_vm4, 1.0, %v1578_v13  ;;  %v431_v53 = vsel %vm430_vm7, 0.0, %v1581_v52 }
 0x32c   :  { %vm422_vm5 = vcmp.gt.f32.partialorder %v1750_v48, 0.5  ;;  %v432_v54 = vsel %vm104_vm1, %v431_v53, -inf }
 0x32d   :  { %v423_v49 = vsel %vm422_vm5, 1, %v1579_v33 }
 0x32e   :  { %425 = vperm.xlu0 %1422, %v423_v49  }
 0x3ad   :  { %v426_v7 = vpop.permute.xlu0 %425 }
 0x3ae   :  { %vm427_vm6 = vcmp.eq.s32.totalorder %v426_v7, 1 }
 0x3af   :  { %v1758_v12 = vsel %vm427_vm6, %v1754_v5, %v1670_v23 }
 0x3b0   :  { %v622_v14 = vand.u32 2147483647, %v1758_v12  ;;  %1241 = vmatmul.mubr.msk.f32.vlgmr.msra.gmra.mrb[4].mxu0 %vm104_vm1, %v1758_v12  ;;  %v625_v24 = vmin.f32 %v1758_v12, 2.0 }
 0x3b1   :  { %1358 = vmatpush3.bf16.msra.mxu0 %v1357_v8  ;;  %1270 = vmatprep.mubr.msk.f32.mxu0 %vm1577_vm0, %v1578_v13 }
 0x3b2   :  { %v623_v16 = vmax.f32 %v622_v14, 0.1  ;;  %1359 = vmatprep.subr.bf16.mxu0 %v1575_v0 }
 0x3b4   :  { %v624_v18 = vmin.f32 %v623_v16, 3.0 }
 0x3b5   :  { %1361 = vmatpush3.bf16.msra.mxu0 %v1360_v15 }
 0x3b6   :  { %v626_v21 = vadd.f32 1e-08, %v624_v18  ;;  %1362 = vmatprep.subr.bf16.mxu0 %v1575_v0 }
 0x3b8   :  { %1454 = vlog2.f32 %v626_v21 }
 0x3c2   :  { %v1455_v23 = vpop.eup %1454 }
 0x3c3   :  { %v628_v25 = vmul.f32 0.6931472, %v1455_v23 }
 0x3c5   :  { %v629_v26 = vmul.f32 %v628_v25, %v625_v24 }
 0x3c7   :  { %v630_v28 = vmul.f32 1.442695, %v629_v26 }
 0x3c9   :  { %1456 = vpow2.f32 %v630_v28 }
 0x3d3   :  { %v1457_v30 = vpop.eup %1456 }
 0x3d4   :  { %v636_v31 = vmul.f32 %v1457_v30, %v1121_v29 }
 0x3d6   :  { %v637_v32 = vmin.f32 %v636_v31, 1000.0 }
 0x3d8   :  { %1271 = vmatmul.mubr.msk.f32.vlgmr.msra.gmra.mrb[6].mxu0 %vm104_vm1, %v637_v32 }
 0x3d9   :  { %1364 = vmatpush3.bf16.msra.mxu0 %v1676_v47  ;;  %1281 = vmatprep.mubr.msk.f32.mxu0 %vm1577_vm0, %v1578_v13 }
 0x3da   :  { %1365 = vmatprep.subr.bf16.mxu0 %v1575_v0 }
 0x3dd   :  { %1367 = vmatpush3.bf16.msra.mxu0 %v1682_v50  ;;  %v1122_v50 = vld [vmem:[#allocation7 + $0x4f] ss:$0 sm:$0xff] }
 0x3de   :  { %1380 = vmatprep.subr.bf16.mxu0 %v1575_v0 }
 0x483   :  { %v517_v40 = vpop.f32.mrb[4].mxu0 }
 0x484   :  { %v518_v41 = vadd.f32 %v517_v40, %v447_v39  ;;  %v1242_v3 = vpop.f32.mrb[5].mxu0 }
 0x486   :  { %v521_v47 = vmax.f32 %v518_v41, 0.0 }
 0x488   :  { %1260 = vmatmul.mubr.msk.f32.vlgmr.msra.gmra.mrb[2].mxu1 %vm191_vm2, %v521_v47 }
 0x489   :  { %1370 = vmatpush3.bf16.msra.mxu1 %v1658_v17  ;;  %1300 = vmatprep.mubr.msk.f32.mxu1 %vm1577_vm0, %v1578_v13 }
 0x48a   :  { %1371 = vmatprep.subr.bf16.mxu1 %v1575_v0 }
 0x48d   :  { %1373 = vmatpush3.bf16.msra.mxu1 %v1661_v19 }
 0x48e   :  { %1374 = vmatprep.subr.bf16.mxu1 %v1575_v0 }
 0x491   :  { %1376 = vmatpush3.bf16.msra.mxu1 %v1665_v22 }
 0x492   :  { %1377 = vmatprep.subr.bf16.mxu1 %v1575_v0 }
 0x495   :  { %1379 = vmatpush3.bf16.msra.mxu1 %v1703_v59 }
 0x4ab   :  { %v727_v9 = vpop.f32.mrb[6].mxu0 }
 0x4ac   :  { %v728_v42 = vadd.f32 %v1122_v50, %v727_v9  ;;  %v1272_v43 = vpop.f32.mrb[7].mxu0 }
 0x4ad   :  { %v1125_v43 = vld [vmem:[#allocation7 + $0x55] ss:$0 sm:$0xff] }
 0x4ae   :  { %v731_v17 = vsel %vm104_vm1, %v728_v42, 0.0 }
 0x4af   :  { %732 = vadd.xlane.f32.xlu0 %v731_v17 }
 0x4c5   :  { %1435 = vrot.lane.b32.xlu0 %v1737_v34, %s1582_s24 }
 0x53c   :  { %v733_v1 = vpop.xlane.xlu0 %732 }
 0x53d   :  { %v734_v46 = vmul.f32 0.03125, %v733_v1 }
 0x53f   :  { %v735_v59 = vsub.f32 %v728_v42, %v734_v46 }
 0x540   :  { %v1436_v47 = vpop.permute.xlu0 %1435 }
 0x541   :  { %v736_v55 = vmul.f32 %v735_v59, %v735_v59  ;;  %v1438_v9 = vunpack.i.h.bf16 %v1436_v47  ;;  %v1437_v42 = vunpack.i.l.bf16 %v1436_v47 }
 0x543   :  { %v737_v56 = vsel %vm104_vm1, %v736_v55, 0.0 }
 0x55b   :  { %v591_v6 = vpop.f32.mrb[2].mxu1 }
 0x55c   :  { %v592_v44 = vadd.f32 %v1725_v20, %v591_v6  ;;  %v1261_v19 = vpop.f32.mrb[3].mxu1  ;;  %v1381_v6 = vpack.c.bf16 %v1438_v9, %v1437_v42 }
 0x55e   :  { %v595_v22 = vmax.f32 %v592_v44, 0.0 }
 0x560   :  { %v596_v49 = vmul.f32 %v1728_v27, %v595_v22 }
 0x562   :  { %v597_v51 = vsel %vm104_vm1, %v596_v49, 0.0 }
 0x563   :  { %598 = vadd.xlane.f32.xlu1 %v597_v51 }
 0x567   :  { %433 = vmax.xlane.f32.xlu1 %v432_v54 }
 0x56b   :  { %738 = vadd.xlane.f32.xlu1 %v737_v56 }
 0x5f0   :  { %v599_v57 = vpop.xlane.xlu1 %598 }
 0x5f1   :  { %v600_v58 = vadd.f32 %v1745_v36, %v599_v57  ;;  %v1129_v57 = vld [vmem:[#allocation7 + $0x4d] ss:$0 sm:$0xff] }
 0x5f3   :  { %v1120_v60 = vmul.f32 -1.442695, %v600_v58 }
 0x5f4   :  { %v434_v61 = vpop.xlane.xlu1 %433 }
 0x5f5   :  { %1458 = vpow2.f32 %v1120_v60  ;;  %v435_v5 = vrot.slane %v434_v61, 4 }
 0x5f7   :  { %v436_v7 = vmax.f32 %v434_v61, %v435_v5 }
 0x5f8   :  { %v739_v38 = vpop.xlane.xlu1 %738 }
 0x5f9   :  { %v437_v8 = vrot.slane %v436_v7, 2  ;;  %v740_v39 = vmul.f32 0.03125, %v739_v38 }
 0x5fb   :  { %v438_v11 = vmax.f32 %v436_v7, %v437_v8  ;;  %v741_v40 = vadd.f32 1e-05, %v740_v39 }
 0x5fd   :  { %v439_v16 = vrot.slane %v438_v11, 1 }
 0x5ff   :  { %v1459_v2 = vpop.eup %1458  ;;  %v440_v21 = vmax.f32 %v438_v11, %v439_v16  ;;  %v1130_v11 = vld [vmem:[#allocation7 + $0x50] ss:$0 sm:$0xff] }
 0x600   :  { %v604_v4 = vadd.f32 1.0, %v1459_v2 }
 0x601   :  { %v441_v25 = vsub.f32 1.0, %v440_v21 }
 0x602   :  { %1460 = vrcp.f32 %v604_v4 }
 0x603   :  { %v442_v29 = vmul.f32 %v441_v25, %v1750_v48  ;;  %1462 = vrsqrt.f32 %v741_v40  ;;  %v1124_v48 = vld [vmem:[#allocation7 + $0x52] ss:$0 sm:$0xff] }
 0x60c   :  { %v1461_v10 = vpop.eup %1460 }
 0x60d   :  { %v607_v14 = vsel %vm285_vm3, %v1461_v10, 0.0  ;;  %v1463_v41 = vpop.eup %1462 }
 0x60e   :  { %v608_v15 = vrot.slane %v607_v14, 4  ;;  %v743_v3 = vmul.f32 %v1463_v41, %v735_v59 }
 0x610   :  { %v609_v18 = vadd.f32 %v608_v15, %v607_v14  ;;  %v748_v50 = vmul.f32 %v1124_v48, %v743_v3 }
 0x612   :  { %v610_v34 = vrot.slane %v609_v18, 2  ;;  %v753_v17 = vadd.f32 %v1125_v43, %v748_v50 }
 0x614   :  { %v611_v23 = vadd.f32 %v610_v34, %v609_v18 }
 0x616   :  { %v612_v24 = vrot.slane %v611_v23, 1 }
 0x618   :  { %v613_v26 = vadd.f32 %v612_v24, %v611_v23  ;;  %v761_v23 = vand.u32 2147483647, %v753_v17 }
 0x61a   :  { %v614_v28 = vmul.f32 0.125, %v613_v26  ;;  %vm762_vm11 = vcmp.le.f32.partialorder %v761_v23, 3.4028235e+38 }
 0x61c   :  { %vm615_vm8 = vcmp.ge.f32.partialorder %v614_v28, 0.1 }
 0x61d   :  { %v616_v30 = vsel %vm615_vm8, 1.0, %v1578_v13 }
 0x61e   :  { %v1804_v31 = vmul.f32 %v616_v30, %v442_v29  ;;  %v763_v29 = vsel %vm762_vm11, 0.0, %v1581_v52 }
 0x61f   :  { %v764_v30 = vsel %vm104_vm1, %v763_v29, -inf }
 0x620   :  { %vm754_vm9 = vcmp.gt.f32.partialorder %v1804_v31, 0.5 }
 0x621   :  { %v755_v32 = vsel %vm754_vm9, 1, %v1579_v33 }
 0x622   :  { %757 = vperm.xlu1 %1433, %v755_v32  }
 0x626   :  { %1440 = vrot.lane.b32.xlu1 %v1742_v35, %s1582_s24 }
 0x6a1   :  { %v758_v1 = vpop.permute.xlu1 %757 }
 0x6a2   :  { %vm759_vm10 = vcmp.eq.s32.totalorder %v758_v1, 1 }
 0x6a3   :  { %v1811_v44 = vsel %vm759_vm10, %v753_v17, %v1758_v12 }
 0x6a4   :  { %v955_v35 = vand.u32 2147483647, %v1811_v44  ;;  %1282 = vmatmul.mubr.msk.f32.vlgmr.msra.gmra.mrb[8].mxu0 %vm104_vm1, %v1811_v44  ;;  %v958_v53 = vmin.f32 %v1811_v44, 2.0 }
 0x6a5   :  { %v1441_v19 = vpop.permute.xlu1 %1440  ;;  %1382 = vmatpush3.bf16.msra.mxu0 %v1381_v6  ;;  %1311 = vmatprep.mubr.msk.f32.mxu0 %vm1577_vm0, %v1578_v13 }
 0x6a6   :  { %v956_v45 = vmax.f32 %v955_v35, 0.1  ;;  %v1443_v46 = vunpack.i.h.bf16 %v1441_v19  ;;  %v1442_v22 = vunpack.i.l.bf16 %v1441_v19  ;;  %1383 = vmatprep.subr.bf16.mxu0 %v1575_v0  ;;  %v775_v0 = vmul.f32 2.0, %v1775_v37 }
 0x6a8   :  { %v957_v49 = vmin.f32 %v956_v45, 3.0  ;;  %v1384_v59 = vpack.c.bf16 %v1443_v46, %v1442_v22  ;;  %v776_v2 = vadd.f32 %v775_v0, %v1709_v63 }
 0x6aa   :  { %v959_v51 = vadd.f32 1e-08, %v957_v49  ;;  %1385 = vmatpush3.bf16.msra.mxu0 %v1384_v59  ;;  %v780_v4 = vrot.slane %v776_v2, %v1707_v62 }
 0x6ac   :  { %1464 = vlog2.f32 %v959_v51 }
 0x6b6   :  { %v1465_v12 = vpop.eup %1464 }
 0x6b7   :  { %v961_v54 = vmul.f32 0.6931472, %v1465_v12 }
 0x6b9   :  { %v962_v55 = vmul.f32 %v961_v54, %v958_v53 }
 0x6bb   :  { %v963_v56 = vmul.f32 1.442695, %v962_v55 }
 0x6bd   :  { %1466 = vpow2.f32 %v963_v56 }
 0x6c7   :  { %v1467_v58 = vpop.eup %1466 }
 0x6c8   :  { %v969_v60 = vmul.f32 %v1467_v58, %v1129_v57  ;;  %v1132_v58 = vld [vmem:[#allocation7 + $0x53] ss:$0 sm:$0xff] }
 0x6ca   :  { %v970_v61 = vmin.f32 %v969_v60, 1000.0 }
 0x6cc   :  { %1312 = vmatmul.mubr.msk.f32.vlgmr.msra.gmra.mrb[10].mxu0 %vm104_vm1, %v970_v61  ;;  %v1133_v61 = vld [vmem:[#allocation7 + $0x56] ss:$0 sm:$0xff] }
 0x777   :  { %v850_v5 = vpop.f32.mrb[8].mxu0 }
 0x778   :  { %v851_v7 = vadd.f32 %v850_v5, %v780_v4  ;;  %v1283_v8 = vpop.f32.mrb[9].mxu0 }
 0x77a   :  { %v854_v10 = vmax.f32 %v851_v7, 0.0 }
 0x77c   :  { %1301 = vmatmul.mubr.msk.f32.vlgmr.msra.gmra.mrb[4].mxu1 %vm191_vm2, %v854_v10 }
 0x79f   :  { %v1056_v14 = vpop.f32.mrb[10].mxu0 }
 0x7a0   :  { %v1057_v15 = vadd.f32 %v1130_v11, %v1056_v14  ;;  %v1313_v16 = vpop.f32.mrb[11].mxu0 }
 0x7a2   :  { %v1060_v18 = vsel %vm104_vm1, %v1057_v15, 0.0 }
 0x7a3   :  { %1061 = vadd.xlane.f32.xlu0 %v1060_v18 }
 0x830   :  { %v1062_v34 = vpop.xlane.xlu0 %1061 }
 0x831   :  { %v1063_v62 = vmul.f32 0.03125, %v1062_v34 }
 0x833   :  { %v1064_v26 = vsub.f32 %v1057_v15, %v1063_v62 }
 0x835   :  { %v1065_v32 = vmul.f32 %v1064_v26, %v1064_v26 }
 0x837   :  { %v1066_v38 = vsel %vm104_vm1, %v1065_v32, 0.0 }
 0x84f   :  { %v924_v21 = vpop.f32.mrb[4].mxu1 }
 0x850   :  { %v925_v37 = vadd.f32 %v1725_v20, %v924_v21  ;;  %v1302_v63 = vpop.f32.mrb[5].mxu1 }
 0x852   :  { %v928_v24 = vmax.f32 %v925_v37, 0.0 }
 0x854   :  { %v929_v25 = vmul.f32 %v1728_v27, %v928_v24 }
 0x856   :  { %v930_v28 = vsel %vm104_vm1, %v929_v25, 0.0 }
 0x857   :  { %931 = vadd.xlane.f32.xlu1 %v930_v28 }
 0x85b   :  { %765 = vmax.xlane.f32.xlu1 %v764_v30 }
 0x85f   :  { %1067 = vadd.xlane.f32.xlu1 %v1066_v38 }
 0x8e4   :  { %v932_v20 = vpop.xlane.xlu1 %931 }
 0x8e5   :  { %v933_v39 = vadd.f32 %v1745_v36, %v932_v20 }
 0x8e7   :  { %v1128_v40 = vmul.f32 -1.442695, %v933_v39 }
 0x8e8   :  { %v766_v27 = vpop.xlane.xlu1 %765 }
 0x8e9   :  { %1468 = vpow2.f32 %v1128_v40  ;;  %v767_v48 = vrot.slane %v766_v27, 4 }
 0x8eb   :  { %v768_v47 = vmax.f32 %v766_v27, %v767_v48 }
 0x8ec   :  { %v1068_v53 = vpop.xlane.xlu1 %1067 }
 0x8ed   :  { %v769_v50 = vrot.slane %v768_v47, 2  ;;  %v1069_v54 = vmul.f32 0.03125, %v1068_v53 }
 0x8ef   :  { %v770_v9 = vmax.f32 %v768_v47, %v769_v50  ;;  %v1070_v55 = vadd.f32 1e-05, %v1069_v54 }
 0x8f1   :  { %v771_v17 = vrot.slane %v770_v9, 1 }
 0x8f3   :  { %v1469_v41 = vpop.eup %1468  ;;  %v772_v35 = vmax.f32 %v770_v9, %v771_v17 }
 0x8f4   :  { %v937_v3 = vadd.f32 1.0, %v1469_v41 }
 0x8f5   :  { %v773_v45 = vsub.f32 1.0, %v772_v35 }
 0x8f6   :  { %1470 = vrcp.f32 %v937_v3 }
 0x8f7   :  { %v774_v49 = vmul.f32 %v773_v45, %v1804_v31  ;;  %1472 = vrsqrt.f32 %v1070_v55 }
 0x900   :  { %v1471_v52 = vpop.eup %1470 }
 0x901   :  { %v940_v42 = vsel %vm285_vm3, %v1471_v52, 0.0  ;;  %v1473_v56 = vpop.eup %1472 }
 0x902   :  { %v941_v43 = vrot.slane %v940_v42, 4  ;;  %v1072_v57 = vmul.f32 %v1473_v56, %v1064_v26 }
 0x904   :  { %v942_v1 = vadd.f32 %v941_v43, %v940_v42  ;;  %v1077_v60 = vmul.f32 %v1132_v58, %v1072_v57 }
 0x906   :  { %v943_v6 = vrot.slane %v942_v1, 2  ;;  %v1082_v31 = vadd.f32 %v1133_v61, %v1077_v60 }
 0x908   :  { %v944_v19 = vadd.f32 %v943_v6, %v942_v1 }
 0x90a   :  { %v945_v36 = vrot.slane %v944_v19, 1 }
 0x90c   :  { %v946_v46 = vadd.f32 %v945_v36, %v944_v19 }
 0x90e   :  { %v947_v22 = vmul.f32 0.125, %v946_v46 }
 0x910   :  { %vm948_vm12 = vcmp.ge.f32.partialorder %v947_v22, 0.1 }
 0x911   :  { %v949_v59 = vsel %vm948_vm12, 1.0, %v1578_v13 }
 0x912   :  { %v950_v51 = vmul.f32 %v949_v59, %v774_v49 }
 0x914   :  { %vm1083_vm13 = vcmp.gt.f32.partialorder %v950_v51, 0.5 }
 0x915   :  { %v1084_v12 = vsel %vm1083_vm13, 1, %v1579_v33 }
 0x916   :  { %1086 = vperm.xlu0 %1422, %v1084_v12  }
 0x995   :  { %v1087_v0 = vpop.permute.xlu0 %1086 }
 0x996   :  { %vm1088_vm14 = vcmp.eq.s32.totalorder %v1087_v0, 1 }
 0x997   :  { %v1089_v13 = vsel %vm1088_vm14, %v1082_v31, %v1811_v44 }
 0x998   :  { %1090 = vst.msk [vmem:[#allocation8] sm:$0xff] %vm104_vm1, %v1089_v13 }
 0x999   :  { %1551 = shalt.err (!%p1548_p0)
}
 0x99a   :  { %s1552_s30 = scalar_lea.hbm %s1854_s3, 128 }
 0x99b   :  { %p1553_p1 = scmp.ne.s32.totalorder %s1854_s3, %s1552_s30  ;;  %p1556_p2 = scmp.lt.u32.totalorder %s1552_s30, %s1854_s3 }
 0x99d   :  { %p1558_p3 = pnand %p1556_p2, %p1553_p1 }
 0x99f   :  { %1561 = shalt.err (!%p1558_p3)
}
 0x9a0   :  { %1100 = dma.vmem_to_hbm [thread:$0]  %s1098_s26, 128, %s1854_s3, [#allocation4]  }
 0x9a1   :  { %1566 = dma.done.wait [#allocation4], 128  }
 0x9a2   :  { %1567 = vsyncadd [#allocation4], 4294967168 }
 0x9a3   :  { %1104 = vsyncpa [#allocation3], 1 }
 0x9a4   :  { %1105 = vsyncpa [#allocation6], 1 }
 0x9a5   :  { %1106 = vsyncpa [#allocation4], 1 }

</bundles_post_ra>
